<compile_context>
chip_gen: v7x
topology: tpu7x:2x2x1
jax: 0.10.0
libtpu: 0.0.40
codegen_flags: <defaults>
</compile_context>

<pallas_src>
import jax
import jax.numpy as jnp
from jax.experimental import pallas as pl

HIDDEN = 32   # hidden_size
OUTPUT = 16   # output_size (vocab)
SEQ = 8       # encoder sequence length (<= MAX_LENGTH)


def _fused_decoder_kernel(pre_ref,     # (T, 4H) hoisted emb-side gate contributions + biases
                          ctx0_ref,    # (1, H)  initial context
                          hid0_ref,    # (1, H)  initial hidden (n_layers = 1)
                          enc_ref,     # (S, H)  encoder outputs
                          eprojT_ref,  # (H, S)  (enc @ W_attn^T + b_attn)^T, hoisted
                          wch_ref,     # (2H, 4H) recurrent GRU gate weights [r|z|n_x|n_h]
                          wout_ref,    # (2H, V)  output Linear, rows ordered [ctx | hid]
                          bout_ref,    # (1, V)   output bias
                          slab_ref):   # (T, LANES) lane-dense packed outputs (written once)
    T = pre_ref.shape[0]
    H = ctx0_ref.shape[1]
    S = enc_ref.shape[0]
    V = wout_ref.shape[1]

    # Load resident operands once; everything below is straight-line vreg code.
    pre = pre_ref[...]          # (T, 4H)
    enc = enc_ref[...]          # (S, H)
    eprojT = eprojT_ref[...]    # (H, S)
    w_ch = wch_ref[...]         # (2H, 4H)

    ctx = ctx0_ref[...]         # (1, H) carried in vregs
    h = hid0_ref[...]           # (1, H)

    hc_rows = []
    attn_rows = []
    # TODO(synk): for very large T switch to lax.fori_loop + VMEM row scratch to bound
    # code size; at decoder step counts here full unrolling gives the scheduler the
    # whole cross-step chain.
    for t in range(T):
        # --- GRU cell: one (1,2H)@(2H,4H) matmul; gates layout [r | z | n_x | n_h] ---
        ch = jnp.concatenate([ctx, h], axis=1)                               # (1, 2H)
        gates = pre[t:t + 1, :] + jnp.dot(ch, w_ch,
                                          preferred_element_type=jnp.float32)  # (1, 4H)
        r = jax.nn.sigmoid(gates[:, 0:H])
        z = jax.nn.sigmoid(gates[:, H:2 * H])
        n = jnp.tanh(gates[:, 2 * H:3 * H] + r * gates[:, 3 * H:4 * H])
        h_new = (1.0 - z) * n + z * h                                        # (1, H)

        # --- attention ('general'); encoder-side projection was hoisted ---
        energies = jnp.dot(h_new, eprojT,
                           preferred_element_type=jnp.float32)               # (1, S)
        energies = energies - jnp.max(energies, axis=1, keepdims=True)
        p = jnp.exp(energies)
        inv = pl.reciprocal(jnp.sum(p, axis=1, keepdims=True), approx=True)
        attn_w = p * inv                                                     # (1, S)

        # --- context = attn_weights @ encoder_outputs ---
        context = jnp.dot(attn_w, enc, preferred_element_type=jnp.float32)   # (1, H)

        hc_rows.append(jnp.concatenate([context, h_new], axis=1))            # (1, 2H)
        attn_rows.append(attn_w)
        ctx, h = context, h_new

    hc = jnp.concatenate(hc_rows, axis=0)                                    # (T, 2H)
    attn_all = jnp.concatenate(attn_rows, axis=0)                            # (T, S)

    # --- output Linear, off the serial chain: one (T,2H)@(2H,V) matmul after the loop ---
    out_all = jnp.dot(hc, wout_ref[...],
                      preferred_element_type=jnp.float32) + bout_ref[...]    # (T, V)

    # --- single lane-dense write: [out | context | h_new | attn_w | 0pad] ---
    pad = slab_ref.shape[1] - (V + 2 * H + S)
    pieces = [out_all, hc, attn_all]
    if pad > 0:
        pieces.append(jnp.zeros((T, pad), jnp.float32))
    slab_ref[...] = jnp.concatenate(pieces, axis=1)


def pack_params(params):
    """One-time parameter packing (all transposes / gate re-layout done here, NOT per call)."""
    H = params['hidden_size']
    f32 = jnp.float32
    W_ih_T = params['W_ih'].astype(f32).T            # (2H, 3H): rows 0:H = emb, H:2H = ctx
    W_hh_T = params['W_hh'].astype(f32).T            # (H, 3H)
    Wie = W_ih_T[0:H, :]                             # embedding part
    Wic = W_ih_T[H:2 * H, :]                         # context part
    zH = jnp.zeros((H, H), f32)
    b_ih = params['b_ih'].astype(f32)
    b_hh = params['b_hh'].astype(f32)

    # Hoisted per-token gate contribution: emb @ W_emb4 + b4 -> lanes [r | z | n_x | n_h]
    W_emb4 = jnp.concatenate([Wie, zH], axis=1)                              # (H, 4H)
    b4 = jnp.concatenate([b_ih[0:H] + b_hh[0:H],
                          b_ih[H:2 * H] + b_hh[H:2 * H],
                          b_ih[2 * H:3 * H],
                          b_hh[2 * H:3 * H]])[None, :]                       # (1, 4H)

    # Recurrent gate weight: cat(ctx, h) @ W_ch -> lanes [r | z | n_x | n_h] (= 128 @ H=32)
    W_ch = jnp.concatenate([
        jnp.concatenate([Wic, zH], axis=1),                                          # ctx rows
        jnp.concatenate([W_hh_T[:, 0:2 * H], zH, W_hh_T[:, 2 * H:3 * H]], axis=1),   # h rows
    ], axis=0)                                                               # (2H, 4H)

    # Output Linear, rows reordered to match the kernel's [context | hidden] row layout.
    W_out_T = params['W_out'].astype(f32).T                                  # (2H, V)
    W_out_ch = jnp.concatenate([W_out_T[H:2 * H, :], W_out_T[0:H, :]], axis=0)

    return {
        'emb': params['embedding'].astype(f32),          # (V, H)
        'W_emb4': W_emb4, 'b4': b4, 'W_ch': W_ch,
        'W_out_ch': W_out_ch,
        'b_out': params['b_out'].astype(f32)[None, :],
        'W_attn': params['W_attn'].astype(f32),
        'b_attn': params['b_attn'].astype(f32),
    }


@jax.jit
def attn_decoder_decode(packed, word_inputs, last_context, last_hidden, encoder_outputs):
    """Run T teacher-forced decode steps in a single fused pallas_call (no grid).

    Teacher forced: step t consumes word_inputs[t] (not the argmax of step t-1).
    Returns per-step (outputs (T,V), contexts (T,H), hiddens (T,H), attn_weights (T,S)).
    """
    H = packed['emb'].shape[1]
    V = packed['W_out_ch'].shape[1]
    S = encoder_outputs.shape[0]
    T = word_inputs.shape[0]
    lanes = ((V + 2 * H + S + 127) // 128) * 128

    enc = encoder_outputs.astype(jnp.float32)
    # Hoisted: attention projection over the encoder side (depends only on enc), transposed.
    eprojT = (enc @ packed['W_attn'].T + packed['b_attn']).T                 # (H, S)
    # Hoisted: embedding lookup + embedding-side gate contribution, batched over all T steps.
    emb_rows = packed['emb'][word_inputs.astype(jnp.int32)]                  # (T, H)
    pre = emb_rows @ packed['W_emb4'] + packed['b4']                         # (T, 4H)

    slab = pl.pallas_call(
        _fused_decoder_kernel,
        out_shape=jax.ShapeDtypeStruct((T, lanes), jnp.float32),
    )(
        pre,
        last_context.astype(jnp.float32),
        last_hidden.reshape(1, H).astype(jnp.float32),   # n_layers = 1 assumed
        enc,
        eprojT,
        packed['W_ch'],
        packed['W_out_ch'],
        packed['b_out'],
    )

    outputs = slab[:, 0:V]
    contexts = slab[:, V:V + H]
    hiddens = slab[:, V + H:V + 2 * H]
    attn_ws = slab[:, V + 2 * H:V + 2 * H + S]
    return outputs, contexts, hiddens, attn_ws


def attn_decoder_forward(packed, word_input, last_context, last_hidden, encoder_outputs):
    """Mirrors AttnDecoderRNN.forward (n_layers=1, attn_model='general', batch=1)."""
    # TODO(synk): kernel hard-assumes n_layers=1 and batch=1 (the module defaults);
    # GRU inter-layer dropout is a no-op in that configuration and is omitted.
    H = packed['emb'].shape[1]
    S = encoder_outputs.shape[0]
    out, ctx, hid, attn_w = attn_decoder_decode(
        packed, word_input.reshape(-1), last_context, last_hidden, encoder_outputs)
    return out[0:1], ctx[0:1], hid[0:1].reshape(1, 1, H), attn_w[0:1].reshape(1, 1, S)


def ref_forward(params, word_input, last_context, last_hidden, encoder_outputs):
    """Pure-JAX reference of a single decoder forward step."""
    H = params['hidden_size']
    emb = params['embedding'][word_input[0]][None, :]
    x = jnp.concatenate([emb, last_context], axis=1)
    h = last_hidden.reshape(1, H)
    gi = x @ params['W_ih'].T + params['b_ih']
    gh = h @ params['W_hh'].T + params['b_hh']
    r = jax.nn.sigmoid(gi[:, :H] + gh[:, :H])
    z = jax.nn.sigmoid(gi[:, H:2 * H] + gh[:, H:2 * H])
    n = jnp.tanh(gi[:, 2 * H:] + r * gh[:, 2 * H:])
    h_new = (1.0 - z) * n + z * h
    e_proj = encoder_outputs @ params['W_attn'].T + params['b_attn']
    energies = jnp.sum(e_proj * h_new, axis=1)
    w = jax.nn.softmax(energies)[None, :]
    context = w @ encoder_outputs
    out = jnp.concatenate([h_new, context], axis=1) @ params['W_out'].T + params['b_out']
    return out, context, h_new, w


def ref_decode_loop(params, word_inputs, last_context, last_hidden, encoder_outputs):
    outs, ctxs, hids, ws = [], [], [], []
    ctx, hid = last_context, last_hidden
    for t in range(word_inputs.shape[0]):
        o, ctx, h_new, w = ref_forward(params, word_inputs[t:t + 1], ctx, hid,
                                       encoder_outputs)
        hid = h_new.reshape(1, 1, -1)
        outs.append(o); ctxs.append(ctx); hids.append(h_new); ws.append(w)
    return (jnp.concatenate(outs, 0), jnp.concatenate(ctxs, 0),
            jnp.concatenate(hids, 0), jnp.concatenate(ws, 0))


if __name__ == "__main__":
    H, V, S = HIDDEN, OUTPUT, SEQ
    key = jax.random.PRNGKey(0)
    keys = jax.random.split(key, 12)

    def u(k, shape, scale=0.1):
        return jax.random.uniform(k, shape, jnp.float32, -scale, scale)

    # deterministic synthetic parameters (shapes from AttnDecoderRNN.__init__)
    params = {
        'hidden_size': H, 'output_size': V,
        'embedding': u(keys[0], (V, H), 1.0),       # nn.Embedding(output_size, hidden_size)
        'W_ih': u(keys[1], (3 * H, 2 * H)),         # nn.GRU(hidden*2, hidden) weight_ih_l0
        'W_hh': u(keys[2], (3 * H, H)),             # weight_hh_l0
        'b_ih': u(keys[3], (3 * H,)),
        'b_hh': u(keys[4], (3 * H,)),
        'W_attn': u(keys[5], (H, H)),               # Attn('general').attn = Linear(H, H)
        'b_attn': u(keys[6], (H,)),
        'W_out': u(keys[7], (V, 2 * H)),            # nn.Linear(hidden*2, output_size)
        'b_out': u(keys[8], (V,)),
    }
    packed = pack_params(params)                    # one-time transposes / gate repacking

    word_input = jnp.array([3], dtype=jnp.int32)    # single decoder token
    last_context = u(keys[9], (1, H), 1.0)
    last_hidden = u(keys[10], (1, 1, H), 1.0)       # (n_layers, batch=1, H)
    encoder_outputs = u(keys[11], (S, H), 1.0)      # (seq_len, H), batch=1 squeezed

    # --- single forward step (matches AttnDecoderRNN.forward) ---
    out, ctx, hid, attn_w = attn_decoder_forward(
        packed, word_input, last_context, last_hidden, encoder_outputs)
    jax.block_until_ready((out, ctx, hid, attn_w))

    r_out, r_ctx, r_hid, r_w = ref_forward(
        params, word_input, last_context, last_hidden, encoder_outputs)
    assert out.shape == (1, V) and ctx.shape == (1, H)
    assert hid.shape == (1, 1, H) and attn_w.shape == (1, 1, S)
    # approx=True reciprocal in the softmax -> tolerances relaxed vs the f32 reference.
    assert jnp.allclose(out, r_out, atol=5e-3)
    assert jnp.allclose(ctx, r_ctx, atol=5e-3)
    assert jnp.allclose(hid.reshape(1, H), r_hid, atol=5e-3)
    assert jnp.allclose(attn_w.reshape(1, S), r_w, atol=5e-3)

    # --- fused multi-step decode: T teacher-forced steps in ONE pallas_call, no grid ---
    T = 5
    word_inputs = jnp.array([3, 7, 1, 0, 9], dtype=jnp.int32)
    outs, ctxs, hids, ws = attn_decoder_decode(
        packed, word_inputs, last_context, last_hidden, encoder_outputs)
    jax.block_until_ready((outs, ctxs, hids, ws))

    r_outs, r_ctxs, r_hids, r_ws = ref_decode_loop(
        params, word_inputs, last_context, last_hidden, encoder_outputs)
    assert outs.shape == (T, V) and ctxs.shape == (T, H)
    assert hids.shape == (T, H) and ws.shape == (T, S)
    assert jnp.allclose(outs, r_outs, atol=5e-3)
    assert jnp.allclose(ctxs, r_ctxs, atol=5e-3)
    assert jnp.allclose(hids, r_hids, atol=5e-3)
    assert jnp.allclose(ws, r_ws, atol=5e-3)

    print("KERNEL_OK")
</pallas_src>

<mosaic_0001>
module attributes {stable_mosaic.version = 11 : i64} {
  func.func @_fused_decoder_kernel(%arg0: memref<1x128xf32, #tpu.memory_space<vmem>>, %arg1: memref<1x32xf32, #tpu.memory_space<vmem>>, %arg2: memref<1x32xf32, #tpu.memory_space<vmem>>, %arg3: memref<8x32xf32, #tpu.memory_space<vmem>>, %arg4: memref<32x8xf32, #tpu.memory_space<vmem>>, %arg5: memref<64x128xf32, #tpu.memory_space<vmem>>, %arg6: memref<64x16xf32, #tpu.memory_space<vmem>>, %arg7: memref<1x16xf32, #tpu.memory_space<vmem>>, %arg8: memref<1x128xf32, #tpu.memory_space<vmem>>) attributes {dimension_semantics = [], scalar_prefetch = 0 : i64, scratch_operands = 0 : i64, tpu.core_type = #tpu.core_type<tc>} {
    %c0 = arith.constant 0 : index
    %c0_0 = arith.constant 0 : index
    %0 = vector.load %arg0[%c0, %c0_0] : memref<1x128xf32, #tpu.memory_space<vmem>>, vector<1x128xf32>
    %c0_1 = arith.constant 0 : index
    %c0_2 = arith.constant 0 : index
    %1 = vector.load %arg3[%c0_1, %c0_2] : memref<8x32xf32, #tpu.memory_space<vmem>>, vector<8x32xf32>
    %c0_3 = arith.constant 0 : index
    %c0_4 = arith.constant 0 : index
    %2 = vector.load %arg4[%c0_3, %c0_4] : memref<32x8xf32, #tpu.memory_space<vmem>>, vector<32x8xf32>
    %c0_5 = arith.constant 0 : index
    %c0_6 = arith.constant 0 : index
    %3 = vector.load %arg5[%c0_5, %c0_6] : memref<64x128xf32, #tpu.memory_space<vmem>>, vector<64x128xf32>
    %c0_7 = arith.constant 0 : index
    %c0_8 = arith.constant 0 : index
    %4 = vector.load %arg1[%c0_7, %c0_8] : memref<1x32xf32, #tpu.memory_space<vmem>>, vector<1x32xf32>
    %c0_9 = arith.constant 0 : index
    %c0_10 = arith.constant 0 : index
    %5 = vector.load %arg2[%c0_9, %c0_10] : memref<1x32xf32, #tpu.memory_space<vmem>>, vector<1x32xf32>
    %6 = tpu.concatenate %4, %5 in 1 : vector<1x32xf32>, vector<1x32xf32> -> vector<1x64xf32>
    %cst = arith.constant dense<0.000000e+00> : vector<1x128xf32>
    %7 = tpu.matmul %6, %3, %cst {dimension_numbers = #tpu.dot_dimension_numbers<[1], [0], [0], [1], [0, 0, 1, 1], [], []>} : vector<1x64xf32>, vector<64x128xf32>, vector<1x128xf32> -> vector<1x128xf32>
    %8 = arith.addf %0, %7 : vector<1x128xf32>
    %9 = vector.extract_strided_slice %8 {offsets = [0, 0], sizes = [1, 32], strides = [1, 1]} : vector<1x128xf32> to vector<1x32xf32>
    %10 = arith.negf %9 : vector<1x32xf32>
    %11 = math.exp %10 : vector<1x32xf32>
    %cst_11 = arith.constant 1.000000e+00 : f32
    %12 = vector.broadcast %cst_11 : f32 to vector<1x32xf32>
    %13 = arith.addf %12, %11 : vector<1x32xf32>
    %14 = arith.divf %12, %13 : vector<1x32xf32>
    %15 = vector.extract_strided_slice %8 {offsets = [0, 32], sizes = [1, 32], strides = [1, 1]} : vector<1x128xf32> to vector<1x32xf32>
    %16 = arith.negf %15 : vector<1x32xf32>
    %17 = math.exp %16 : vector<1x32xf32>
    %cst_12 = arith.constant 1.000000e+00 : f32
    %18 = vector.broadcast %cst_12 : f32 to vector<1x32xf32>
    %19 = arith.addf %18, %17 : vector<1x32xf32>
    %20 = arith.divf %18, %19 : vector<1x32xf32>
    %21 = vector.extract_strided_slice %8 {offsets = [0, 64], sizes = [1, 32], strides = [1, 1]} : vector<1x128xf32> to vector<1x32xf32>
    %22 = vector.extract_strided_slice %8 {offsets = [0, 96], sizes = [1, 32], strides = [1, 1]} : vector<1x128xf32> to vector<1x32xf32>
    %23 = arith.mulf %14, %22 : vector<1x32xf32>
    %24 = arith.addf %21, %23 : vector<1x32xf32>
    %25 = math.tanh %24 : vector<1x32xf32>
    %cst_13 = arith.constant 1.000000e+00 : f32
    %26 = vector.broadcast %cst_13 : f32 to vector<1x32xf32>
    %27 = arith.subf %26, %20 : vector<1x32xf32>
    %28 = arith.mulf %27, %25 : vector<1x32xf32>
    %29 = arith.mulf %20, %5 : vector<1x32xf32>
    %30 = arith.addf %28, %29 : vector<1x32xf32>
    %cst_14 = arith.constant dense<0.000000e+00> : vector<1x8xf32>
    %31 = tpu.matmul %30, %2, %cst_14 {dimension_numbers = #tpu.dot_dimension_numbers<[1], [0], [0], [1], [0, 0, 1, 1], [], []>} : vector<1x32xf32>, vector<32x8xf32>, vector<1x8xf32> -> vector<1x8xf32>
    %cst_15 = arith.constant dense<0xFF800000> : vector<1xf32>
    %32 = vector.multi_reduction <maximumf>, %31, %cst_15 [1] : vector<1x8xf32> to vector<1xf32>
    %33 = vector.shape_cast %32 : vector<1xf32> to vector<1x1xf32>
    %34 = vector.broadcast %33 : vector<1x1xf32> to vector<1x8xf32>
    %35 = arith.subf %31, %34 : vector<1x8xf32>
    %36 = math.exp %35 : vector<1x8xf32>
    %cst_16 = arith.constant dense<0.000000e+00> : vector<1xf32>
    %37 = vector.multi_reduction <add>, %36, %cst_16 [1] : vector<1x8xf32> to vector<1xf32>
    %38 = vector.shape_cast %37 : vector<1xf32> to vector<1x1xf32>
    %39 = tpu.reciprocal %38 {approx = true} : vector<1x1xf32> -> vector<1x1xf32>
    %40 = vector.broadcast %39 : vector<1x1xf32> to vector<1x8xf32>
    %41 = arith.mulf %36, %40 : vector<1x8xf32>
    %cst_17 = arith.constant dense<0.000000e+00> : vector<1x32xf32>
    %42 = tpu.matmul %41, %1, %cst_17 {dimension_numbers = #tpu.dot_dimension_numbers<[1], [0], [0], [1], [0, 0, 1, 1], [], []>} : vector<1x8xf32>, vector<8x32xf32>, vector<1x32xf32> -> vector<1x32xf32>
    %43 = tpu.concatenate %42, %30 in 1 : vector<1x32xf32>, vector<1x32xf32> -> vector<1x64xf32>
    %c0_18 = arith.constant 0 : index
    %c0_19 = arith.constant 0 : index
    %44 = vector.load %arg6[%c0_18, %c0_19] : memref<64x16xf32, #tpu.memory_space<vmem>>, vector<64x16xf32>
    %cst_20 = arith.constant dense<0.000000e+00> : vector<1x16xf32>
    %45 = tpu.matmul %43, %44, %cst_20 {dimension_numbers = #tpu.dot_dimension_numbers<[1], [0], [0], [1], [0, 0, 1, 1], [], []>} : vector<1x64xf32>, vector<64x16xf32>, vector<1x16xf32> -> vector<1x16xf32>
    %c0_21 = arith.constant 0 : index
    %c0_22 = arith.constant 0 : index
    %46 = vector.load %arg7[%c0_21, %c0_22] : memref<1x16xf32, #tpu.memory_space<vmem>>, vector<1x16xf32>
    %47 = arith.addf %45, %46 : vector<1x16xf32>
    %cst_23 = arith.constant 0.000000e+00 : f32
    %48 = vector.broadcast %cst_23 : f32 to vector<1x40xf32>
    %49 = tpu.concatenate %47, %43, %41, %48 in 1 : vector<1x16xf32>, vector<1x64xf32>, vector<1x8xf32>, vector<1x40xf32> -> vector<1x128xf32>
    %c0_24 = arith.constant 0 : index
    %c0_25 = arith.constant 0 : index
    %50 = vector.load %arg8[%c0_24, %c0_25] : memref<1x128xf32, #tpu.memory_space<vmem>>, vector<1x128xf32>
    tpu.vector_store %arg8[%c0_24, %c0_25], %49 {strides = array<i32>} : memref<1x128xf32, #tpu.memory_space<vmem>>, vector<1x128xf32>,
    return
  }
}

</mosaic_0001>

<bundles_post_ra>
// kernel: attn_decoder_decode.1
= control target key start
LH: loop header
LB: loop body
LE: loop exit
PB: predicated region body
PF: predicated region fallthrough
CT: control target
= control target key end

     0   :  { %v46_v0 = vlaneseq  ;;  %v555_v1 = vmov 0.0|0.0   ;;  %vm556_vm0 = vmmov 0   ;;  %v557_v8 = vmov 0.0   ;;  %s560_s11 = smov 96   ;;  %s561_s19 = smov 80   ;;  %s717_s2 = inlined_call_operand.vmem [shape: f32[1,32], index: 2, kind: input, shape index: {}]   ;;  %s718_s5 = inlined_call_operand.vmem [shape: f32[64,128], index: 5, kind: input, shape index: {}]   ;;  %s719_s1 = inlined_call_operand.vmem [shape: f32[1,32], index: 1, kind: input, shape index: {}]   ;;  %s720_s0 = inlined_call_operand.vmem [shape: f32[1,128], index: 0, kind: input, shape index: {}]   ;;  %s721_s4 = inlined_call_operand.vmem [shape: f32[32,8], index: 4, kind: input, shape index: {}]   ;;  %s722_s3 = inlined_call_operand.vmem [shape: f32[8,32], index: 3, kind: input, shape index: {}]   ;;  %s723_s6 = inlined_call_operand.vmem [shape: f32[64,16], index: 6, kind: input, shape index: {}]   ;;  %s724_s7 = inlined_call_operand.vmem [shape: f32[1,16], index: 7, kind: input, shape index: {}]   ;;  %s725_s8 = inlined_call_operand.vmem [shape: f32[1,128], index: 8, kind: output, shape index: {}]  }
   0x1   :  { %507 = vmatprep.subr.bf16.mxu0 %v555_v1  ;;  %v35_v2 = vld [vmem:[%s718_s5] sm:$0xff]  ;;  %v36_v3 = vld [vmem:[%s718_s5 + $0x8] sm:$0xff]  ;;  %v37_v6 = vld [vmem:[%s718_s5 + $0x10] sm:$0xff]  ;;  %469 = vmatprep.mubr.msk.f32.mxu0 %vm556_vm0, %v557_v8  ;;  %vm53_vm1 = vcmask 261120   ;;  %vm55_vm2 = vcmask 523264   ;;  %vm237_vm3 = vcmask 57344  }
   0x2   :  { %v615_v4 = vshrl.u32 %v46_v0, 7  ;;  %v508_v5 = vpack.c.bf16 %v36_v3, %v35_v2  ;;  %v38_v7 = vld [vmem:[%s718_s5 + $0x18] sm:$0xff]  ;;  %483 = vmatprep.subr.mxu1 %v557_v8  ;;  %v44_v9 = vld [vmem:[%s717_s2] sm:$0x1]  ;;  %485 = vmatprep.mubr.msk.f32.mxu1 %vm556_vm0, %v557_v8  ;;  %v40_v13 = vld [vmem:[%s718_s5 + $0x28] sm:$0xff]  ;;  %s558_s2 = smov 32  }
   0x3   :  { %v511_v11 = vpack.c.bf16 %v38_v7, %v37_v6  ;;  %v39_v12 = vld [vmem:[%s718_s5 + $0x20] sm:$0xff]  ;;  %v41_v16 = vld [vmem:[%s718_s5 + $0x30] sm:$0xff]  ;;  %v42_v17 = vld [vmem:[%s718_s5 + $0x38] sm:$0xff]  ;;  %vm249_vm4 = vcmask 64512   ;;  %s562_s26 = smov 16   ;;  %vm412_vm5 = vcmask 130048  }
   0x4   :  { %v48_v10 = vsub.s32 0, %v615_v4  ;;  %509 = vmatpush3.bf16.msra.mxu0 %v508_v5  ;;  %v514_v15 = vpack.c.bf16 %v40_v13, %v39_v12  ;;  %v517_v18 = vpack.c.bf16 %v42_v17, %v41_v16  ;;  %v43_v19 = vld [vmem:[%s719_s1] sm:$0x1]  ;;  %s559_s1 = smov 64   ;;  %v32_v35 = vld [vmem:[%s721_s4 + $0x8] sm:$0xff]  ;;  %v33_v36 = vld [vmem:[%s721_s4 + $0x10] sm:$0xff] }
   0x5   :  { %510 = vmatprep.subr.bf16.mxu0 %v555_v1  ;;  %v29_v22 = vld [vmem:[%s720_s0] sm:$0x1]  ;;  %v34_v38 = vld [vmem:[%s721_s4 + $0x18] sm:$0xff]  ;;  %v325_v60 = vld [vmem:[%s723_s6 + $0x8] sm:$0xff]  ;;  %vm414_vm6 = vcmask 654336   ;;  %vm416_vm7 = vcmask 719872  }
   0x6   :  { %v49_v14 = vrot.slane %v44_v9, %v48_v10  ;;  %v31_v34 = vld [vmem:[%s721_s4] sm:$0xff]  ;;  %v523_v39 = vpack.c.bf16 %v34_v38, %v33_v36  ;;  %v326_v0 = vld [vmem:[%s723_s6 + $0x10] sm:$0xff]  ;;  %v327_v2 = vld [vmem:[%s723_s6 + $0x18] sm:$0xff] }
   0x7   :  { %v520_v37 = vpack.c.bf16 %v32_v35, %v31_v34  ;;  %v30_v57 = vld [vmem:[%s722_s3] sm:$0xff]  ;;  %v529_v3 = vpack.c.bf16 %v327_v2, %v326_v0  ;;  %v329_v5 = vld [vmem:[%s723_s6 + $0x28] sm:$0xff]  ;;  %v330_v7 = vld [vmem:[%s723_s6 + $0x30] sm:$0xff] }
   0x8   :  { %50 = vrot.lane.b32.xlu0 %v49_v14, %s558_s2  ;;  %512 = vmatpush3.bf16.msra.mxu0 %v511_v11  ;;  %v324_v59 = vld [vmem:[%s723_s6] sm:$0xff] }
   0x9   :  { %513 = vmatprep.subr.bf16.mxu0 %v555_v1  ;;  %484 = vmatpush3.msra.mxu1 %v30_v57  ;;  %v526_v62 = vpack.c.bf16 %v325_v60, %v324_v59  ;;  %v328_v4 = vld [vmem:[%s723_s6 + $0x20] sm:$0xff] }
   0xa   :  { %525 = vmatprep.subr.bf16.mxu1 %v555_v1  ;;  %v532_v6 = vpack.c.bf16 %v329_v5, %v328_v4  ;;  %v332_v13 = vld [vmem:[%s724_s7] sm:$0x1] }
   0xc   :  { %515 = vmatpush3.bf16.msra.mxu0 %v514_v15 }
   0xd   :  { %516 = vmatprep.subr.bf16.mxu0 %v555_v1 }
  0x10   :  { %518 = vmatpush3.bf16.msra.mxu0 %v517_v18 }
  0x11   :  { %519 = vmatprep.subr.bf16.mxu0 %v555_v1 }
  0x7a   :  { %v51_v20 = vpop.permute.xlu0 %50 }
  0x7b   :  { %v54_v21 = vsel %vm53_vm1, %v43_v19, %v51_v20 }
  0x7c   :  { %470 = vmatmul.mubr.msk.f32.vlgmr.msra.gmra.mrb[0].mxu0 %vm55_vm2, %v54_v21 }
  0x7d   :  { %480 = vmatprep.mubr.msk.f32.mxu0 %vm556_vm0, %v557_v8  ;;  %521 = vmatpush3.bf16.msra.mxu0 %v520_v37 }
  0x7e   :  { %522 = vmatprep.subr.bf16.mxu0 %v555_v1 }
  0x81   :  { %524 = vmatpush3.bf16.msra.mxu0 %v523_v39 }
 0x14f   :  { %v125_v23 = vpop.f32.mrb[0].mxu0 }
 0x150   :  { %v129_v24 = vadd.f32 %v125_v23, %v29_v22  ;;  %v471_v25 = vpop.f32.mrb[1].mxu0 }
 0x152   :  { %137 = vrot.lane.b32.xlu0 %v129_v24, %s558_s2  ;;  %v424_v26 = vmul.f32 -1.442695, %v129_v24 }
 0x154   :  { %545 = vpow2.f32 %v424_v26 }
 0x156   :  { %153 = vrot.lane.b32.xlu0 %v44_v9, %s558_s2 }
 0x15e   :  { %v546_v27 = vpop.eup %545 }
 0x15f   :  { %v133_v28 = vadd.f32 1.0, %v546_v27 }
 0x161   :  { %547 = vrcp.f32 %v133_v28 }
 0x16b   :  { %v548_v29 = vpop.eup %547 }
 0x16c   :  { %v147_v42 = vsub.f32 1.0, %v548_v29 }
 0x1c4   :  { %v138_v30 = vpop.permute.xlu0 %137 }
 0x1c5   :  { %v140_v31 = vmul.f32 %v548_v29, %v138_v30 }
 0x1c7   :  { %142 = vrot.lane.b32.xlu1 %v140_v31, %s559_s1 }
 0x1c8   :  { %v154_v41 = vpop.permute.xlu0 %153 }
 0x1c9   :  { %v156_v44 = vmul.f32 %v548_v29, %v154_v41 }
 0x239   :  { %v143_v32 = vpop.permute.xlu1 %142 }
 0x23a   :  { %v145_v33 = vadd.f32 %v143_v32, %v129_v24 }
 0x23c   :  { %549 = vtanh.f32 %v145_v33 }
 0x246   :  { %v550_v40 = vpop.eup %549 }
 0x247   :  { %149 = vrot.lane.b32.xlu1 %v550_v40, %s560_s11 }
 0x2b9   :  { %v150_v43 = vpop.permute.xlu1 %149 }
 0x2ba   :  { %v152_v45 = vmul.f32 %v150_v43, %v147_v42 }
 0x2bc   :  { %v157_v46 = vadd.f32 %v156_v44, %v152_v45 }
 0x2be   :  { %v162_v47 = vrot.slane %v157_v46, %v48_v10 }
 0x2c0   :  { %163 = vrot.lane.b32.xlu1 %v162_v47, %s560_s11 }
 0x332   :  { %v164_v48 = vpop.permute.xlu1 %163 }
 0x333   :  { %481 = vmatmul.mubr.msk.f32.vlgmr.msra.gmra.mrb[2].mxu0 %vm53_vm1, %v164_v48 }
 0x406   :  { %v233_v49 = vpop.f32.mrb[2].mxu0 }
 0x407   :  { %v482_v50 = vpop.f32.mrb[3].mxu0  ;;  %v238_v51 = vsel %vm237_vm3, %v233_v49, -inf }
 0x408   :  { %239 = vmax.xlane.f32.xlu0 %v238_v51 }
 0x495   :  { %v240_v52 = vpop.xlane.xlu0 %239 }
 0x496   :  { %v241_v53 = vsub.f32 %v233_v49, %v240_v52 }
 0x498   :  { %v242_v54 = vmul.f32 1.442695, %v241_v53 }
 0x49a   :  { %551 = vpow2.f32 %v242_v54 }
 0x4a4   :  { %v552_v55 = vpop.eup %551 }
 0x4a5   :  { %v244_v56 = vsel %vm237_vm3, %v552_v55, 0.0 }
 0x4a6   :  { %245 = vadd.xlane.f32.xlu1 %v244_v56 }
 0x533   :  { %v246_v58 = vpop.xlane.xlu1 %245 }
 0x534   :  { %553 = vrcp.f32 %v246_v58 }
 0x53e   :  { %v554_v61 = vpop.eup %553 }
 0x53f   :  { %v248_v63 = vmul.f32 %v554_v61, %v552_v55 }
 0x541   :  { %409 = vrot.lane.b32.xlu1 %v248_v63, %s561_s19  ;;  %486 = vmatmul.mubr.msk.f32.vlgmr.msra.gmra.mrb[0].mxu1 %vm249_vm4, %v248_v63 }
 0x542   :  { %527 = vmatpush3.bf16.msra.mxu1 %v526_v62  ;;  %504 = vmatprep.mubr.msk.f32.mxu1 %vm556_vm0, %v557_v8  ;;  %v331_v8 = vld [vmem:[%s723_s6 + $0x38] sm:$0xff] }
 0x543   :  { %528 = vmatprep.subr.bf16.mxu1 %v555_v1  ;;  %v535_v9 = vpack.c.bf16 %v331_v8, %v330_v7 }
 0x546   :  { %530 = vmatpush3.bf16.msra.mxu1 %v529_v3 }
 0x547   :  { %531 = vmatprep.subr.bf16.mxu1 %v555_v1 }
 0x54a   :  { %533 = vmatpush3.bf16.msra.mxu1 %v532_v6 }
 0x54b   :  { %534 = vmatprep.subr.bf16.mxu1 %v555_v1 }
 0x54e   :  { %536 = vmatpush3.bf16.msra.mxu1 %v535_v9 }
 0x5b3   :  { %v410_v1 = vpop.permute.xlu1 %409 }
 0x614   :  { %v319_v10 = vpop.f32.mrb[0].mxu1 }
 0x615   :  { %v487_v11 = vpop.f32.mrb[1].mxu1  ;;  %v323_v12 = vsel %vm53_vm1, %v319_v10, %v157_v46 }
 0x616   :  { %406 = vrot.lane.b32.xlu0 %v323_v12, %s562_s26  ;;  %505 = vmatmul.mubr.msk.f32.vlgmr.msra.gmra.mrb[2].mxu1 %vm55_vm2, %v323_v12 }
 0x688   :  { %v407_v17 = vpop.permute.xlu0 %406 }
 0x6e9   :  { %v402_v14 = vpop.f32.mrb[2].mxu1 }
 0x6ea   :  { %v403_v15 = vadd.f32 %v402_v14, %v332_v13  ;;  %v506_v16 = vpop.f32.mrb[3].mxu1 }
 0x6ec   :  { %v413_v18 = vsel %vm412_vm5, %v403_v15, %v407_v17 }
 0x6ed   :  { %v415_v19 = vsel %vm414_vm6, %v413_v18, %v410_v1 }
 0x6ee   :  { %v417_v20 = vsel %vm416_vm7, %v415_v19, 0.0 }
 0x6ef   :  { %418 = vst [vmem:[%s725_s8] sm:$0x1] %v417_v20 }

</bundles_post_ra>
